<compile_context>
chip_gen: v7x
topology: tpu7x:2x2x1
jax: 0.10.0
libtpu: 0.0.40
codegen_flags: <defaults>
</compile_context>

<pallas_src>
import functools
import math
import numpy as np
import jax
import jax.numpy as jnp
from jax.experimental import pallas as pl
from jax.experimental.pallas import tpu as pltpu


# ----------------------------- tile / generation config -----------------------------------

_TILE_CFG = None


def _tile_config():
    """Generation-aware default tiles: bigger on 128-MiB-VMEM chips (v5e/v6e), conservative on v7x."""
    global _TILE_CFG
    if _TILE_CFG is None:
        try:
            vmem = pltpu.get_tpu_info().vmem_capacity_bytes
        except Exception:
            vmem = 64 * 1024 * 1024
        if vmem >= 100 * 1024 * 1024:       # v5e / v6e (128 MiB VMEM)
            _TILE_CFG = dict(tm=512, tn=512, tk=1024, vmem_limit_bytes=64 * 1024 * 1024)
        else:                               # v7x (64 MiB physical VMEM)
            _TILE_CFG = dict(tm=256, tn=256, tk=512, vmem_limit_bytes=None)
    return _TILE_CFG


def _pick_tile(dim, desired, aligns):
    """Largest tile <= desired that divides dim and is a multiple of one of `aligns`
    (tried in order). Falls back to the full dim (full-dim blocks are always legal)."""
    if dim <= desired:
        return dim
    for a in aligns:
        if dim % a == 0:
            t = max(a, (desired // a) * a)
            while dim % t != 0:
                t -= a
            return t
    return dim


# --------------------- fused (LN) -> matmul -> (bias/act/res) ------------------------------

def _fused_matmul_kernel(x_ref, w_ref, b_ref, *rest, nk, fuse_ln, cache_ln, act, has_res):
    pos = 0
    if fuse_ln:
        g_ref, beta_ref = rest[pos], rest[pos + 1]
        pos += 2
    if has_res:
        res_ref = rest[pos]
        pos += 1
    o_ref = rest[pos]
    pos += 1
    scratch = rest[pos] if len(rest) > pos else None   # LN cache (fuse_ln) or K-accumulator

    if fuse_ln:                      # LN needs the full K row -> wrapper forces tk == K here
        def compute_ln():
            x = x_ref[...].astype(jnp.float32)
            mu = jnp.mean(x, axis=-1, keepdims=True)
            xc = x - mu
            var = jnp.mean(xc * xc, axis=-1, keepdims=True)
            xn = xc * jax.lax.rsqrt(var + 1e-5) * g_ref[...] + beta_ref[...]
            return xn.astype(jnp.bfloat16)

        if cache_ln:
            # compute LN once per row tile (j == 0), reuse for all remaining N tiles
            @pl.when(pl.program_id(1) == 0)
            def _():
                scratch[...] = compute_ln()
            xb = scratch[...]
        else:
            xb = compute_ln()
    else:
        xb = x_ref[...].astype(jnp.bfloat16)

    part = jnp.dot(xb, w_ref[...], preferred_element_type=jnp.float32)

    def finalize(acc):
        out = acc + b_ref[...].astype(jnp.float32)
        if act == "quickgelu":
            out = out * jax.nn.sigmoid(1.702 * out)
        if has_res:
            out = out + res_ref[...].astype(jnp.float32)
        o_ref[...] = out.astype(o_ref.dtype)

    if nk == 1:
        finalize(part)
    else:
        acc_ref = scratch
        k = pl.program_id(2)

        @pl.when(k == 0)
        def _():
            acc_ref[...] = part

        @pl.when(k > 0)
        def _():
            acc_ref[...] += part

        @pl.when(k == nk - 1)
        def _():
            finalize(acc_ref[...])


def fused_linear(x, w, b, *, ln=None, act=None, residual=None,
                 out_dtype=jnp.float32, tm=None, tn=None, tk=None):
    """(optionally LayerNorm(x)) @ w + b, optional QuickGELU, optional residual add.

    x: (M, K); w: (K, N) bf16 (pre-transposed from torch (out,in)); b: (N,).
    """
    cfg = _tile_config()
    tm = cfg['tm'] if tm is None else tm
    tn = cfg['tn'] if tn is None else tn
    tk = cfg['tk'] if tk is None else tk

    M, K = x.shape
    N = w.shape[1]
    fuse_ln = ln is not None
    has_res = residual is not None

    tm_ = _pick_tile(M, tm, (128, 16, 8))
    tn_ = _pick_tile(N, tn, (128,))
    tk_ = K if fuse_ln else _pick_tile(K, tk, (128,))
    nk = K // tk_
    nj = N // tn_
    grid = (M // tm_, nj, nk)
    cache_ln = fuse_ln and nj > 1

    in_specs = [pl.BlockSpec((tm_, tk_), lambda i, j, k: (i, k)),
                pl.BlockSpec((tk_, tn_), lambda i, j, k: (k, j)),
                pl.BlockSpec((1, tn_), lambda i, j, k: (0, j))]
    inputs = [x, w, b.reshape(1, N)]
    if fuse_ln:
        g, beta = ln
        in_specs += [pl.BlockSpec((1, K), lambda i, j, k: (0, 0)),
                     pl.BlockSpec((1, K), lambda i, j, k: (0, 0))]
        inputs += [g.reshape(1, K).astype(jnp.float32),
                   beta.reshape(1, K).astype(jnp.float32)]
    if has_res:
        in_specs.append(pl.BlockSpec((tm_, tn_), lambda i, j, k: (i, j)))
        inputs.append(residual)

    if cache_ln:
        scratch = [pltpu.VMEM((tm_, K), jnp.bfloat16)]
    elif nk > 1:
        scratch = [pltpu.VMEM((tm_, tn_), jnp.float32)]
    else:
        scratch = []

    # When the LN result is cached across j, the j axis must stay on one core.
    sems = ("parallel", "arbitrary" if cache_ln else "parallel", "arbitrary")

    kern = functools.partial(_fused_matmul_kernel, nk=nk, fuse_ln=fuse_ln,
                             cache_ln=cache_ln, act=act, has_res=has_res)
    return pl.pallas_call(
        kern,
        out_shape=jax.ShapeDtypeStruct((M, N), out_dtype),
        grid=grid,
        in_specs=in_specs,
        out_specs=pl.BlockSpec((tm_, tn_), lambda i, j, k: (i, j)),
        scratch_shapes=scratch,
        compiler_params=pltpu.CompilerParams(
            dimension_semantics=sems,
            vmem_limit_bytes=cfg['vmem_limit_bytes']),
    )(*inputs)


# -------- attention: per-head softmax + single (L,D)@(D,D) out-proj + bias + residual -------

def _attention_kernel(qkv_ref, wo_ref, bo_ref, res_ref, *rest, heads, dh, width, has_mask):
    if has_mask:
        mask_ref, o_ref = rest
    else:
        (o_ref,) = rest

    qkv = qkv_ref[0]                       # (L, 3D) bf16 ; q already scaled by 1/sqrt(Dh)
    D = width
    o_parts = []
    for h in range(heads):                 # static per-head lane slices (no HBM transpose)
        q = qkv[:, h * dh:(h + 1) * dh]
        k = qkv[:, D + h * dh: D + (h + 1) * dh]
        v = qkv[:, 2 * D + h * dh: 2 * D + (h + 1) * dh]
        s = jax.lax.dot_general(q, k, (((1,), (1,)), ((), ())),
                                preferred_element_type=jnp.float32)   # (L, L)
        if has_mask:
            s = s + mask_ref[...]
        m = jnp.max(s, axis=-1, keepdims=True)
        p = jnp.exp(s - m)
        p = p * pl.reciprocal(jnp.sum(p, axis=-1, keepdims=True), approx=True)
        o_parts.append(jnp.dot(p.astype(jnp.bfloat16), v,
                               preferred_element_type=jnp.float32))   # (L, Dh)

    o = jnp.concatenate(o_parts, axis=-1).astype(jnp.bfloat16)        # (L, D), head-major lanes
    out = jnp.dot(o, wo_ref[...], preferred_element_type=jnp.float32) # single full-K matmul
    out = out + bo_ref[...].astype(jnp.float32) + res_ref[0].astype(jnp.float32)
    o_ref[0] = out.astype(o_ref.dtype)


def attention_block(qkv, wo, bo, residual, mask=None, *, heads):
    # qkv: (N, L, 3D) bf16; wo: (D, D) bf16; bo: (D,); residual: (N, L, D) bf16
    N, L, D3 = qkv.shape
    D = D3 // 3
    dh = D // heads
    kern = functools.partial(_attention_kernel, heads=heads, dh=dh, width=D,
                             has_mask=mask is not None)
    in_specs = [pl.BlockSpec((1, L, 3 * D), lambda i: (i, 0, 0)),
                pl.BlockSpec((D, D), lambda i: (0, 0)),
                pl.BlockSpec((1, D), lambda i: (0, 0)),
                pl.BlockSpec((1, L, D), lambda i: (i, 0, 0))]
    inputs = [qkv, wo, bo.reshape(1, D), residual]
    if mask is not None:
        in_specs.append(pl.BlockSpec((L, L), lambda i: (0, 0)))
        inputs.append(mask)
    # TODO(synk): add a head-tile grid axis (with split out-proj) for v7x megacore on tiny batches.
    return pl.pallas_call(
        kern,
        out_shape=jax.ShapeDtypeStruct((N, L, D), jnp.bfloat16),
        grid=(N,),
        in_specs=in_specs,
        out_specs=pl.BlockSpec((1, L, D), lambda i: (i, 0, 0)),
        compiler_params=pltpu.CompilerParams(dimension_semantics=("parallel",)),
    )(*inputs)


# ------------------------------ row-tiled layernorm (ln_pre) -------------------------------

def _layernorm_kernel(x_ref, g_ref, b_ref, o_ref):
    x = x_ref[...].astype(jnp.float32)
    mu = jnp.mean(x, axis=-1, keepdims=True)
    xc = x - mu
    var = jnp.mean(xc * xc, axis=-1, keepdims=True)
    o_ref[...] = (xc * jax.lax.rsqrt(var + 1e-5) * g_ref[...] + b_ref[...]).astype(o_ref.dtype)


def layernorm(x, g, b, *, rows=512, out_dtype=jnp.bfloat16):
    M, D = x.shape
    tm = _pick_tile(M, rows, (128, 16, 8))
    return pl.pallas_call(
        _layernorm_kernel,
        out_shape=jax.ShapeDtypeStruct((M, D), out_dtype),
        grid=(M // tm,),
        in_specs=[pl.BlockSpec((tm, D), lambda i: (i, 0)),
                  pl.BlockSpec((1, D), lambda i: (0, 0)),
                  pl.BlockSpec((1, D), lambda i: (0, 0))],
        out_specs=pl.BlockSpec((tm, D), lambda i: (i, 0)),
        compiler_params=pltpu.CompilerParams(dimension_semantics=("parallel",)),
    )(x, g.reshape(1, D).astype(jnp.float32), b.reshape(1, D).astype(jnp.float32))


# ------------------- l2-normalize (once) + T-tiled scaled logit matmul ---------------------

def _l2norm_kernel(x_ref, o_ref):
    x = x_ref[...].astype(jnp.float32)
    n = jnp.maximum(jnp.sqrt(jnp.sum(x * x, axis=-1, keepdims=True)), 1e-12)
    o_ref[...] = (x / n).astype(o_ref.dtype)


def l2_normalize(x, *, rows=1024):
    M, D = x.shape
    tm = _pick_tile(M, rows, (128, 16, 8))
    return pl.pallas_call(
        _l2norm_kernel,
        out_shape=jax.ShapeDtypeStruct((M, D), jnp.float32),
        grid=(M // tm,),
        in_specs=[pl.BlockSpec((tm, D), lambda i: (i, 0))],
        out_specs=pl.BlockSpec((tm, D), lambda i: (i, 0)),
        compiler_params=pltpu.CompilerParams(dimension_semantics=("parallel",)),
    )(x)


def _logits_kernel(img_ref, txt_ref, s_ref, o_ref):
    logits = jax.lax.dot_general(img_ref[...], txt_ref[...], (((1,), (1,)), ((), ())),
                                 preferred_element_type=jnp.float32)
    o_ref[...] = s_ref[0, 0] * logits


def scaled_logits(img_n, txt_n, scale, *, tt=1024):
    # img_n: (B, E) normalized; txt_n: (T, E) normalized (normalized once, outside this kernel).
    B, E = img_n.shape
    T = txt_n.shape[0]
    tt_ = _pick_tile(T, tt, (128,))
    return pl.pallas_call(
        _logits_kernel,
        out_shape=jax.ShapeDtypeStruct((B, T), jnp.float32),
        grid=(T // tt_,),
        in_specs=[pl.BlockSpec((B, E), lambda t: (0, 0)),
                  pl.BlockSpec((tt_, E), lambda t: (t, 0)),
                  pl.BlockSpec((1, 1), lambda t: (0, 0))],
        out_specs=pl.BlockSpec((B, tt_), lambda t: (0, t)),
        compiler_params=pltpu.CompilerParams(dimension_semantics=("parallel",)),
    )(img_n, txt_n, scale.reshape(1, 1).astype(jnp.float32))


# --------------------------------- Transformer (glue) --------------------------------------

def residual_attention_block(x, p, mask, heads):
    N, L, D = x.shape
    x2 = x.reshape(N * L, D)

    # LN1 -> fused QKV projection (bf16); reshape only (no HBM transpose)
    qkv = fused_linear(x2, p['in_proj_w'], p['in_proj_b'],
                       ln=(p['ln1_g'], p['ln1_b']), out_dtype=jnp.bfloat16)
    qkv = qkv.reshape(N, L, 3 * D)

    # attention + single full-K out-projection + bias + residual (bf16 residual stream)
    x = attention_block(qkv, p['out_w'], p['out_b'], x, mask, heads=heads)

    # LN2 -> c_fc -> QuickGELU (bf16 hidden), then c_proj + residual
    x2 = x.reshape(N * L, D)
    h = fused_linear(x2, p['fc_w'], p['fc_b'], ln=(p['ln2_g'], p['ln2_b']),
                     act='quickgelu', out_dtype=jnp.bfloat16)
    y = fused_linear(h, p['proj_w'], p['proj_b'], residual=x2, out_dtype=jnp.bfloat16)
    return y.reshape(N, L, D)


# ------------------------------------ CLIP encoders ----------------------------------------

def encode_image(image, vp):
    # image: (N, 3, H, W) float32, NCHW like torch
    N, C, H, W = image.shape
    ps = vp['patch_size']
    g = H // ps
    width = vp['width']

    # conv1 with stride == kernel_size == patch_size  ==  patch extraction + matmul
    patches = image.reshape(N, C, g, ps, g, ps).transpose(0, 2, 4, 1, 3, 5)
    patches = patches.reshape(N * g * g, C * ps * ps)
    x = fused_linear(patches, vp['conv1_w_t'], jnp.zeros((width,), jnp.float32),
                     out_dtype=jnp.float32)
    x = x.reshape(N, g * g, width)

    cls = jnp.broadcast_to(vp['class_embedding'].reshape(1, 1, width), (N, 1, width))
    x = jnp.concatenate([cls, x], axis=1) + vp['pos_embedding'][None]
    L = x.shape[1]
    x = layernorm(x.reshape(N * L, width), vp['ln_pre_g'], vp['ln_pre_b'],
                  out_dtype=jnp.bfloat16).reshape(N, L, width)

    for blk in vp['blocks']:
        x = residual_attention_block(x, blk, None, vp['heads'])   # no attn mask on vision path

    # ln_post on the cls token fused into the output projection
    cls_tok = x[:, 0, :]
    return fused_linear(cls_tok, vp['proj_w'],
                        jnp.zeros((vp['proj_w'].shape[1],), jnp.float32),
                        ln=(vp['ln_post_g'], vp['ln_post_b']), out_dtype=jnp.float32)


def encode_text(text, tp):
    N, L = text.shape
    x = jnp.take(tp['token_embedding'], text, axis=0) + tp['pos_embedding'][:L][None]
    x = x.astype(jnp.bfloat16)                            # bf16 residual stream
    mask = tp['attn_mask'][:L, :L]
    for blk in tp['blocks']:
        x = residual_attention_block(x, blk, mask, tp['heads'])
    eot = jnp.argmax(text, axis=-1)                       # eot = max token id (as in reference)
    x_eot = x[jnp.arange(N), eot]                         # (N, D) — LN is per-row, gather first
    return fused_linear(x_eot, tp['text_projection'],
                        jnp.zeros((tp['text_projection'].shape[1],), jnp.float32),
                        ln=(tp['ln_final_g'], tp['ln_final_b']), out_dtype=jnp.float32)


def clip_forward(image, text, params):
    img = encode_image(image, params['visual'])
    txt = encode_text(text, params['text'])
    img_n = l2_normalize(img)                             # normalize once (idempotent vs ref)
    txt_n = l2_normalize(txt)
    logits_per_image = scaled_logits(img_n, txt_n, jnp.exp(params['logit_scale']))
    return logits_per_image, logits_per_image.T


# -------------------------------------- Param init -----------------------------------------

def init_block(key, width, heads, attn_std, proj_std, fc_std):
    ks = jax.random.split(key, 4)
    f32, bf16 = jnp.float32, jnp.bfloat16
    dh = width // heads
    scale = 1.0 / math.sqrt(dh)

    in_proj_w = attn_std * jax.random.normal(ks[0], (3 * width, width), f32)   # torch (out, in)
    out_w = proj_std * jax.random.normal(ks[1], (width, width), f32)
    fc_w = fc_std * jax.random.normal(ks[2], (4 * width, width), f32)
    proj_w = proj_std * jax.random.normal(ks[3], (width, 4 * width), f32)

    # fold the 1/sqrt(Dh) attention scale into the q output columns of in_proj (and its bias)
    q_scale = jnp.concatenate([jnp.full((width,), scale, f32), jnp.ones((2 * width,), f32)])
    in_proj_w_t = in_proj_w.T * q_scale[None, :]           # (width, 3*width)
    in_proj_b = jnp.zeros((3 * width,), f32) * q_scale

    return dict(
        ln1_g=jnp.ones((width,), f32), ln1_b=jnp.zeros((width,), f32),
        in_proj_w=in_proj_w_t.astype(bf16),                 # (width, 3*width), q-scaled
        in_proj_b=in_proj_b,
        out_w=out_w.T.astype(bf16),                         # (width, width): single full-K matmul
        out_b=jnp.zeros((width,), f32),
        ln2_g=jnp.ones((width,), f32), ln2_b=jnp.zeros((width,), f32),
        fc_w=fc_w.T.astype(bf16),                           # (width, 4*width)
        fc_b=jnp.zeros((4 * width,), f32),
        proj_w=proj_w.T.astype(bf16),                       # (4*width, width)
        proj_b=jnp.zeros((width,), f32),
    )


def init_clip_params(key, *, embed_dim, image_resolution, vision_patch_size,
                     vision_width, vision_layers, context_length, vocab_size,
                     transformer_width, transformer_heads, transformer_layers):
    f32, bf16 = jnp.float32, jnp.bfloat16
    k = jax.random.split(key, 16)

    # --- VisionTransformer (vision_layers is an int => ViT branch of CLIP) ---
    # TODO(synk): ModifiedResNet (tuple vision_layers) branch not implemented.
    vision_heads = max(1, vision_width // 64)
    scale = vision_width ** -0.5
    grid = image_resolution // vision_patch_size
    v_attn_std = vision_width ** -0.5
    v_proj_std = vision_width ** -0.5 * (2 * vision_layers) ** -0.5
    v_fc_std = (2 * vision_width) ** -0.5
    vblocks = [init_block(jax.random.fold_in(k[0], i), vision_width, vision_heads,
                          v_attn_std, v_proj_std, v_fc_std)
               for i in range(vision_layers)]
    conv1_w = scale * jax.random.normal(
        k[1], (vision_width, 3, vision_patch_size, vision_patch_size), f32)
    visual = dict(
        patch_size=vision_patch_size,
        width=vision_width,
        heads=vision_heads,
        conv1_w_t=conv1_w.reshape(vision_width, -1).T.astype(bf16),
        class_embedding=scale * jax.random.normal(k[2], (vision_width,), f32),
        pos_embedding=scale * jax.random.normal(k[3], (grid * grid + 1, vision_width), f32),
        ln_pre_g=jnp.ones((vision_width,), f32), ln_pre_b=jnp.zeros((vision_width,), f32),
        blocks=vblocks,
        ln_post_g=jnp.ones((vision_width,), f32), ln_post_b=jnp.zeros((vision_width,), f32),
        proj_w=(scale * jax.random.normal(k[4], (vision_width, embed_dim), f32)).astype(bf16),
    )

    # --- Text transformer ---
    # TODO(synk): SimpleTokenizer / state_file loading omitted (synthetic init).
    attn_std = transformer_width ** -0.5
    proj_std = transformer_width ** -0.5 * (2 * transformer_layers) ** -0.5
    fc_std = (2 * transformer_width) ** -0.5
    tblocks = [init_block(jax.random.fold_in(k[5], i), transformer_width,
                          transformer_heads, attn_std, proj_std, fc_std)
               for i in range(transformer_layers)]
    idx = jnp.arange(context_length)
    causal = jnp.where(idx[None, :] > idx[:, None], -jnp.inf, 0.0).astype(f32)
    text = dict(
        heads=transformer_heads,
        token_embedding=0.02 * jax.random.normal(k[6], (vocab_size, transformer_width), f32),
        pos_embedding=0.01 * jax.random.normal(k[7], (context_length, transformer_width), f32),
        blocks=tblocks,
        ln_final_g=jnp.ones((transformer_width,), f32),
        ln_final_b=jnp.zeros((transformer_width,), f32),
        text_projection=(attn_std * jax.random.normal(
            k[8], (transformer_width, embed_dim), f32)).astype(bf16),
        attn_mask=causal,
    )

    return dict(visual=visual, text=text,
                logit_scale=jnp.asarray(np.log(1.0 / 0.07), f32))


# ----------------------------------------- main --------------------------------------------

if __name__ == "__main__":
    key = jax.random.PRNGKey(0)
    kp, ki, kt = jax.random.split(key, 3)

    # Small config consistent with CLIP's constructor (ViT vision branch).
    embed_dim = 32
    image_resolution = 16
    vision_patch_size = 8
    vision_width = 64         # heads = width // 64 = 1
    vision_layers = 2
    context_length = 8
    vocab_size = 64
    transformer_width = 32
    transformer_heads = 2
    transformer_layers = 2

    params = init_clip_params(
        kp, embed_dim=embed_dim, image_resolution=image_resolution,
        vision_patch_size=vision_patch_size, vision_width=vision_width,
        vision_layers=vision_layers, context_length=context_length,
        vocab_size=vocab_size, transformer_width=transformer_width,
        transformer_heads=transformer_heads, transformer_layers=transformer_layers)

    batch = 2
    image = jax.random.normal(ki, (batch, 3, image_resolution, image_resolution),
                              jnp.float32)
    body = jax.random.randint(kt, (batch, context_length - 2), 1, vocab_size - 1)
    text = jnp.concatenate(
        [jnp.full((batch, 1), 1, jnp.int32),                 # <sot>
         body.astype(jnp.int32),
         jnp.full((batch, 1), vocab_size - 1, jnp.int32)],   # <eot> = max id
        axis=1)

    logits_per_image, logits_per_text = clip_forward(image, text, params)
    jax.block_until_ready((logits_per_image, logits_per_text))
    assert logits_per_image.shape == (batch, batch)
    assert logits_per_text.shape == (batch, batch)
    assert bool(jnp.all(jnp.isfinite(logits_per_image)))
    print("KERNEL_OK")
</pallas_src>

<mosaic_0001>
module attributes {stable_mosaic.version = 11 : i64} {
  func.func @_fused_matmul_kernel(%arg0: i32, %arg1: i32, %arg2: i32, %arg3: memref<8x192xf32, #tpu.memory_space<vmem>>, %arg4: memref<192x64xbf16, #tpu.memory_space<vmem>>, %arg5: memref<1x64xf32, #tpu.memory_space<vmem>>, %arg6: memref<8x64xf32, #tpu.memory_space<vmem>>) attributes {dimension_semantics = [#tpu.dimension_semantics<parallel>, #tpu.dimension_semantics<parallel>, #tpu.dimension_semantics<arbitrary>], iteration_bounds = array<i64: 1, 1, 1>, scalar_prefetch = 0 : i64, scratch_operands = 0 : i64, tpu.core_type = #tpu.core_type<tc>, window_params = [{transform_indices = @transform_0, window_bounds = array<i64: 8, 192>}, {transform_indices = @transform_1, window_bounds = array<i64: 192, 64>}, {transform_indices = @transform_2, window_bounds = array<i64: 1, 64>}, {transform_indices = @transform_3, window_bounds = array<i64: 8, 64>}]} {
    %c0 = arith.constant 0 : index
    %c0_0 = arith.constant 0 : index
    %0 = vector.load %arg3[%c0, %c0_0] : memref<8x192xf32, #tpu.memory_space<vmem>>, vector<8x192xf32>
    %1 = arith.truncf %0 : vector<8x192xf32> to vector<8x192xbf16>
    %c0_1 = arith.constant 0 : index
    %c0_2 = arith.constant 0 : index
    %2 = vector.load %arg4[%c0_1, %c0_2] : memref<192x64xbf16, #tpu.memory_space<vmem>>, vector<192x64xbf16>
    %cst = arith.constant dense<0.000000e+00> : vector<8x64xf32>
    %3 = tpu.matmul %1, %2, %cst {dimension_numbers = #tpu.dot_dimension_numbers<[1], [0], [0], [1], [0, 0, 1, 1], [], []>} : vector<8x192xbf16>, vector<192x64xbf16>, vector<8x64xf32> -> vector<8x64xf32>
    %c0_3 = arith.constant 0 : index
    %c0_4 = arith.constant 0 : index
    %4 = vector.load %arg5[%c0_3, %c0_4] : memref<1x64xf32, #tpu.memory_space<vmem>>, vector<1x64xf32>
    %5 = vector.broadcast %4 : vector<1x64xf32> to vector<8x64xf32>
    %6 = arith.addf %3, %5 : vector<8x64xf32>
    %c0_5 = arith.constant 0 : index
    %c0_6 = arith.constant 0 : index
    %7 = vector.load %arg6[%c0_5, %c0_6] : memref<8x64xf32, #tpu.memory_space<vmem>>, vector<8x64xf32>
    tpu.vector_store %arg6[%c0_5, %c0_6], %6 {strides = array<i32>} : memref<8x64xf32, #tpu.memory_space<vmem>>, vector<8x64xf32>,
    return
  }
  func.func @transform_0(%arg0: i32, %arg1: i32, %arg2: i32) -> (i32, i32) {
    %c0_i32 = arith.constant 0 : i32
    return %arg0, %arg2 : i32, i32
  }
  func.func @transform_1(%arg0: i32, %arg1: i32, %arg2: i32) -> (i32, i32) {
    %c0_i32 = arith.constant 0 : i32
    return %arg2, %arg1 : i32, i32
  }
  func.func @transform_2(%arg0: i32, %arg1: i32, %arg2: i32) -> (i32, i32) {
    %c0_i32 = arith.constant 0 : i32
    %c0_i32_0 = arith.constant 0 : i32
    return %c0_i32, %arg1 : i32, i32
  }
  func.func @transform_3(%arg0: i32, %arg1: i32, %arg2: i32) -> (i32, i32) {
    %c0_i32 = arith.constant 0 : i32
    return %arg0, %arg1 : i32, i32
  }
}

</mosaic_0001>

<bundles_post_ra>
// kernel: tpu_custom_call.1
= control target key start
LH: loop header
LB: loop body
LE: loop exit
PB: predicated region body
PF: predicated region fallthrough
CT: control target
= control target key end

     0   :  { %v234_v1 = vmov 0   ;;  %vm123_vm0 = vcmask 523264   ;;  %s315_s0 = inlined_call_operand.vmem [shape: f32[8,192], index: 0, kind: input, shape index: {}]   ;;  %s316_s1 = inlined_call_operand.vmem [shape: bf16[192,64], index: 1, kind: input, shape index: {}]   ;;  %s317_s2 = inlined_call_operand.vmem [shape: f32[1,64], index: 2, kind: input, shape index: {}]   ;;  %s318_s3 = inlined_call_operand.hbm [shape: f32[8,64], index: 3, kind: output, shape index: {}]  }
   0x1   :  { %v198_v0 = vld [vmem:[%s316_s1] sm:$0xff]   ;;  %127 = vmatprep.subr.bf16.mxu0 %v234_v1  ;;  %v199_v2 = vld [vmem:[%s316_s1 + $0x8] sm:$0xff]   ;;  %v200_v3 = vld [vmem:[%s316_s1 + $0x10] sm:$0xff]  }
   0x2   :  { %128 = vmatpush1.bf16.msra.mxu0 %v198_v0  ;;  %v201_v4 = vld [vmem:[%s316_s1 + $0x18] sm:$0xff]   ;;  %v17_v5 = vld [vmem:[%s315_s0 + $0x8] sm:$0xff] }
   0x3   :  { %129 = vmatprep.subr.bf16.mxu0 %v234_v1  ;;  %v19_v6 = vpack.c.bf16 %v17_v5, %v17_v5 }
   0x6   :  { %130 = vmatpush1.bf16.msra.mxu0 %v199_v2 }
   0x7   :  { %131 = vmatprep.subr.bf16.mxu0 %v234_v1 }
   0xa   :  { %132 = vmatpush1.bf16.msra.mxu0 %v200_v3 }
   0xb   :  { %133 = vmatprep.subr.bf16.mxu0 %v234_v1 }
   0xc   :  { %8 = vsyncpa [#allocation3], 0  ;;  %v202_v7 = vld [vmem:[%s316_s1 + $0x20] sm:$0xff]   ;;  %195 = vmatprep.mubr.msk.bf16.mxu0 %vm123_vm0, %v19_v6  ;;  %v203_v8 = vld [vmem:[%s316_s1 + $0x28] sm:$0xff]   ;;  %s235_s15 = smov [#allocation2]  }
   0xd   :  { %v204_v9 = vld [vmem:[%s316_s1 + $0x30] sm:$0xff]   ;;  %v205_v10 = vld [vmem:[%s316_s1 + $0x38] sm:$0xff]   ;;  %v206_v11 = vld [vmem:[%s316_s1 + $0x40] sm:$0xff]   ;;  %s174_s16 = sshll.u32 %s235_s15, 4  ;;  %s175_s16 = int_to_ptr.vmem [resolvable:$true] %s174_s16 }
   0xe   :  { %134 = vmatpush1.bf16.msra.mxu0 %v201_v4  ;;  %v207_v12 = vld [vmem:[%s316_s1 + $0x48] sm:$0xff]   ;;  %v208_v13 = vld [vmem:[%s316_s1 + $0x50] sm:$0xff]   ;;  %v209_v14 = vld [vmem:[%s316_s1 + $0x58] sm:$0xff]   ;;  %s210_s1 = scalar_lea.vmem %s175_s16, 128  ;;  %p215_p1 = scmp.lt.s32.totalorder %s175_s16, %s175_s16 }
   0xf   :  { %135 = vmatprep.subr.bf16.mxu0 %v234_v1  ;;  %v16_v15 = vld [vmem:[%s315_s0] sm:$0xff]  ;;  %p211_p0 = scmp.ne.s32.totalorder %s175_s16, %s210_s1  ;;  %p216_p2 = scmp.lt.s32.totalorder %s210_s1, %s210_s1 }
  0x10   :  { %v18_v16 = vpack.c.bf16 %v16_v15, %v16_v15  ;;  %v182_v17 = vld [vmem:[%s317_s2] ss:$0 sm:$0xff] }
  0x11   :  { %p217_p3 = por %p216_p2, %p215_p1 }
  0x12   :  { %136 = vmatpush1.bf16.msra.mxu0 %v202_v7 }
  0x13   :  { %137 = vmatprep.subr.bf16.mxu0 %v234_v1  ;;  %p218_p4 = pnand %p217_p3, %p211_p0 }
  0x16   :  { %138 = vmatpush1.bf16.msra.mxu0 %v203_v8 }
  0x17   :  { %139 = vmatprep.subr.bf16.mxu0 %v234_v1 }
  0x1a   :  { %140 = vmatpush1.bf16.msra.mxu0 %v204_v9 }
  0x1b   :  { %141 = vmatprep.subr.bf16.mxu0 %v234_v1 }
  0x1e   :  { %142 = vmatpush1.bf16.msra.mxu0 %v205_v10 }
  0x1f   :  { %143 = vmatprep.subr.bf16.mxu0 %v234_v1 }
  0x22   :  { %144 = vmatpush1.bf16.msra.mxu0 %v206_v11 }
  0x23   :  { %145 = vmatprep.subr.bf16.mxu0 %v234_v1 }
  0x26   :  { %146 = vmatpush1.bf16.msra.mxu0 %v207_v12 }
  0x27   :  { %147 = vmatprep.subr.bf16.mxu0 %v234_v1 }
  0x2a   :  { %148 = vmatpush1.bf16.msra.mxu0 %v208_v13 }
  0x2b   :  { %149 = vmatprep.subr.bf16.mxu0 %v234_v1 }
  0x2e   :  { %150 = vmatpush1.bf16.msra.mxu0 %v209_v14 }
  0x31   :  { %160 = vmatmul.mubr.bf16.vlgmr.msra.gmra.mrb[0].mxu0 %v18_v16 }
 0x104   :  { %v161_v18 = vpop.f32.mrb[0].mxu0 }
 0x105   :  { %v162_v19 = vadd.f32 %v182_v17, %v161_v18  ;;  %v163_v20 = vpop.f32.mrb[1].mxu0 }
 0x106   :  { %v164_v21 = vpop.f32.mrb[2].mxu0 }
 0x107   :  { %167 = vst.msk [vmem:[#allocation2] sm:$0xff] %vm123_vm0, %v162_v19  ;;  %v165_v22 = vpop.f32.mrb[3].mxu0 }
 0x108   :  { %221 = shalt.err (!%p218_p4)
}
 0x109   :  { %s222_s2 = scalar_lea.hbm %s318_s3, 128 }
 0x10a   :  { %p223_p5 = scmp.ne.s32.totalorder %s318_s3, %s222_s2  ;;  %p226_p6 = scmp.lt.u32.totalorder %s222_s2, %s318_s3 }
 0x10c   :  { %p228_p7 = pnand %p226_p6, %p223_p5 }
 0x10e   :  { %231 = shalt.err (!%p228_p7)
}
 0x10f   :  { %177 = dma.vmem_to_hbm [thread:$0]  %s175_s16, 128, %s318_s3, [#allocation3]  }
 0x110   :  { %232 = dma.done.wait [#allocation3], 128  }
 0x111   :  { %233 = vsyncadd [#allocation3], 4294967168 }
 0x112   :  { %181 = vsyncpa [#allocation3], 1 }

</bundles_post_ra>
